<compile_context>
chip_gen: v7x
topology: tpu7x:2x2x1
jax: 0.10.0
libtpu: 0.0.40
codegen_flags: <defaults>
</compile_context>

<pallas_src>
import functools

import jax
import jax.numpy as jnp
from jax.experimental import pallas as pl
from jax.experimental.pallas import tpu as pltpu

_LANES = 512  # lane-dense last dim (multiple of 128)


def _round_up(a, b):
    return -(-a // b) * b


@functools.lru_cache(maxsize=None)
def _max_tile_rows():
    """Generation-sized row tile: 512 on v5* (16 MiB scoped-VMEM default),
    1024 on v6e / v7x (32 MiB default)."""
    try:
        kind = jax.devices()[0].device_kind.lower()
    except Exception:
        kind = ""
    if "v6" in kind or "v7" in kind:
        return 1024
    return 512


def _layout(total_elems, max_tile_rows):
    """Pick (rows, tile_rows) for the flattened [rows, _LANES] layout.

    Preference order:
      1. a multiple-of-8 tile that divides rows exactly with >= 2 grid steps
         (keeps both v7x TensorCores busy, no padding).
      2. a single whole-array block (block_shape == array dims is always
         (8,128)-legal) for small tensors -> no padding either.
      3. rare fallback: pad rows up to a multiple of max_tile_rows.
    """
    rows = -(-total_elems // _LANES)  # cdiv
    t = min(max_tile_rows, (rows // 2) // 8 * 8)
    while t >= 8:
        if rows % t == 0:
            return rows, t
        t -= 8
    if rows * _LANES * 4 <= (4 << 20):  # <= 4 MiB per f32 ref -> single block
        return rows, rows
    return _round_up(rows, max_tile_rows), max_tile_rows


# --------------------------------------------------------------------------
# Kernels
# --------------------------------------------------------------------------
def _if_step_kernel(x_ref, q_ref, acc_ref,
                    out_ref, q_out_ref, acc_out_ref,
                    *, q_threshold, pos_max, neg_min):
    """One IFNeuron timestep on one [tile_r, lanes] block (pure VPU path)."""
    x = x_ref[...] / q_threshold                  # true divide: bit-parity
    q = q_ref[...] + x
    acc = acc_ref[...].astype(jnp.float32)        # int8 state -> f32 compute

    spike_pos = jnp.logical_and(q - 1.0 >= 0.0, acc < pos_max)
    neg_spike = jnp.logical_and(q < 0.0, acc > neg_min)
    cur = spike_pos.astype(jnp.float32) - neg_spike.astype(jnp.float32)

    out_ref[...] = cur * q_threshold
    q_out_ref[...] = q - cur
    acc_out_ref[...] = (acc + cur).astype(acc_out_ref.dtype)


def _if_seq_kernel(x_ref, q_in_ref, acc_in_ref,
                   out_ref, q_out_ref, acc_out_ref,
                   q_scr, acc_scr,
                   *, q_threshold, pos_max, neg_min):
    """T fused timesteps; q/acc stay resident in VMEM scratch across the
    innermost ("arbitrary") t axis — only x_t / out_t stream per step."""
    t = pl.program_id(1)

    @pl.when(t == 0)
    def _():
        q_scr[...] = q_in_ref[...]
        acc_scr[...] = acc_in_ref[...].astype(jnp.float32)

    x = x_ref[...] / q_threshold
    q = q_scr[...] + x
    acc = acc_scr[...]

    spike_pos = jnp.logical_and(q - 1.0 >= 0.0, acc < pos_max)
    neg_spike = jnp.logical_and(q < 0.0, acc > neg_min)
    cur = spike_pos.astype(jnp.float32) - neg_spike.astype(jnp.float32)

    out_ref[...] = cur * q_threshold
    q_scr[...] = q - cur
    acc_scr[...] = acc + cur

    @pl.when(t == pl.num_programs(1) - 1)
    def _():
        q_out_ref[...] = q_scr[...]
        acc_out_ref[...] = acc_scr[...].astype(acc_out_ref.dtype)


# --------------------------------------------------------------------------
# Cached builders (one trace per padded shape / config)
# --------------------------------------------------------------------------
@functools.lru_cache(maxsize=None)
def _build_step(rows, lanes, tile_r, q_threshold, pos_max, neg_min, acc_dtype):
    kernel = functools.partial(_if_step_kernel, q_threshold=q_threshold,
                               pos_max=pos_max, neg_min=neg_min)
    n = rows * lanes
    acc_b = jnp.dtype(acc_dtype).itemsize
    blk = pl.BlockSpec((tile_r, lanes), lambda i: (i, 0))
    call = pl.pallas_call(
        kernel,
        out_shape=(jax.ShapeDtypeStruct((rows, lanes), jnp.float32),   # spikes*thr
                   jax.ShapeDtypeStruct((rows, lanes), jnp.float32),   # new q
                   jax.ShapeDtypeStruct((rows, lanes), acc_dtype)),    # new acc_q
        grid=(rows // tile_r,),
        in_specs=[blk, blk, blk],
        out_specs=(blk, blk, blk),
        # x->out, q->q_new, acc->acc_new updated in place (no fresh HBM)
        input_output_aliases={0: 0, 1: 1, 2: 2},
        compiler_params=pltpu.CompilerParams(dimension_semantics=("parallel",)),
        cost_estimate=pl.CostEstimate(flops=10 * n, transcendentals=0,
                                      bytes_accessed=2 * n * (8 + acc_b)),
    )

    def step(x2d, q, acc):
        return call(x2d, q, acc)

    return jax.jit(step, donate_argnums=(0, 1, 2))


@functools.lru_cache(maxsize=None)
def _build_seq(n_steps, rows, lanes, tile_r, q_threshold, pos_max, neg_min,
               acc_dtype):
    kernel = functools.partial(_if_seq_kernel, q_threshold=q_threshold,
                               pos_max=pos_max, neg_min=neg_min)
    n = rows * lanes
    acc_b = jnp.dtype(acc_dtype).itemsize
    x_blk = pl.BlockSpec((None, tile_r, lanes), lambda i, t: (t, i, 0))
    st_blk = pl.BlockSpec((tile_r, lanes), lambda i, t: (i, 0))
    call = pl.pallas_call(
        kernel,
        out_shape=(jax.ShapeDtypeStruct((n_steps, rows, lanes), jnp.float32),
                   jax.ShapeDtypeStruct((rows, lanes), jnp.float32),
                   jax.ShapeDtypeStruct((rows, lanes), acc_dtype)),
        grid=(rows // tile_r, n_steps),
        in_specs=[x_blk, st_blk, st_blk],
        out_specs=(x_blk, st_blk, st_blk),
        scratch_shapes=[pltpu.VMEM((tile_r, lanes), jnp.float32),   # resident q
                        pltpu.VMEM((tile_r, lanes), jnp.float32)],  # resident acc
        input_output_aliases={0: 0, 1: 1, 2: 2},
        compiler_params=pltpu.CompilerParams(
            dimension_semantics=("parallel", "arbitrary")),
        cost_estimate=pl.CostEstimate(
            flops=10 * n * n_steps, transcendentals=0,
            bytes_accessed=8 * n * n_steps + 2 * n * (4 + acc_b)),
    )

    def run(x3d, q, acc):
        return call(x3d, q, acc)

    return jax.jit(run, donate_argnums=(0, 1, 2))


# --------------------------------------------------------------------------
# Stateful wrapper mirroring IFNeuron.__init__ / forward / reset
# --------------------------------------------------------------------------
class IFNeuronPallas:

    def __init__(self, q_threshold, level, sym=False):
        self.q_threshold = float(q_threshold)
        self.level = int(level)
        self.sym = sym
        if sym:
            self.pos_max = float(self.level // 2 - 1)
            self.neg_min = float(-self.level // 2)   # floor(-level/2), as in torch
        else:
            self.pos_max = float(self.level // 2 - 1)
            self.neg_min = 0.0
        # acc_q only holds small integers in [neg_min, pos_max]: carry it as
        # int8 in HBM when the range fits (exact round-trip), else f32.
        if -128.0 <= self.neg_min and self.pos_max <= 127.0:
            self.acc_dtype = jnp.int8
        else:
            self.acc_dtype = jnp.float32
        self.reset()

    def reset(self):
        self._q = None    # [rows, _LANES] f32 membrane charge (flattened layout)
        self._acc = None  # [rows, _LANES] int8/f32 spike accumulator
        self.is_work = False

    # -------------------------------------------------------------- helpers
    def _ensure_state(self, rows):
        shape = (rows, _LANES)
        if self._q is None or self._q.shape != shape:
            # q starts at 0.5 broadcast; acc_q starts at zeros (PyTorch init)
            self._q = jnp.full(shape, 0.5, dtype=jnp.float32)
            self._acc = jnp.zeros(shape, dtype=self.acc_dtype)

    # ------------------------------------------------------------- forward
    def forward(self, inp):
        """Single timestep (matches IFNeuron.forward call-by-call)."""
        orig_shape = inp.shape
        x = jnp.asarray(inp, jnp.float32).reshape(-1)
        total = x.size
        rows, tile_r = _layout(total, _max_tile_rows())
        padded = rows * _LANES
        if padded != total:
            # padded cells see x = 0 and never spike (q stays 0.5, acc stays 0)
            x = jnp.pad(x, (0, padded - total))
        x2d = x.reshape(rows, _LANES)

        self._ensure_state(rows)
        self.is_work = True

        step = _build_step(rows, _LANES, tile_r, self.q_threshold,
                           self.pos_max, self.neg_min, self.acc_dtype)
        out2d, self._q, self._acc = step(x2d, self._q, self._acc)

        if padded != total:
            return out2d.reshape(-1)[:total].reshape(orig_shape)
        return out2d.reshape(orig_shape)

    def forward_sequence(self, inp_seq):
        """Fused multi-timestep update. inp_seq has shape [T, ...]; returns the
        [T, ...] spike outputs and leaves the neuron state at the post-T value."""
        inp_seq = jnp.asarray(inp_seq, jnp.float32)
        orig_shape = inp_seq.shape
        n_steps = orig_shape[0]
        x = inp_seq.reshape(n_steps, -1)
        total = x.shape[1]
        rows, tile_r = _layout(total, _max_tile_rows())
        padded = rows * _LANES
        if padded != total:
            x = jnp.pad(x, ((0, 0), (0, padded - total)))
        x3d = x.reshape(n_steps, rows, _LANES)

        self._ensure_state(rows)
        self.is_work = True

        run = _build_seq(n_steps, rows, _LANES, tile_r, self.q_threshold,
                         self.pos_max, self.neg_min, self.acc_dtype)
        out3d, self._q, self._acc = run(x3d, self._q, self._acc)

        if padded != total:
            return out3d.reshape(n_steps, -1)[:, :total].reshape(orig_shape)
        return out3d.reshape(orig_shape)

    __call__ = forward


# --------------------------------------------------------------------------
# Pure-JAX reference of one IFNeuron step (for correctness checks)
# --------------------------------------------------------------------------
def _reference_forward(x, q, acc, q_threshold, pos_max, neg_min):
    xs = x / q_threshold
    q = q + xs
    spike = jnp.logical_and(q - 1.0 >= 0.0, acc < pos_max)
    neg = jnp.logical_and(q < 0.0, acc > neg_min)
    cur = spike.astype(jnp.float32) - neg.astype(jnp.float32)
    acc = acc + cur
    q = q - cur
    return cur * q_threshold, q, acc


if __name__ == "__main__":
    key = jax.random.PRNGKey(0)
    N, C, H, W = 2, 4, 16, 16
    q_threshold = 0.1
    level = 8
    T = 4
    pos_max = float(level // 2 - 1)
    neg_min = 0.0

    keys = jax.random.split(key, T)
    xs = [jax.random.normal(k, (N, C, H, W), dtype=jnp.float32) * 0.3
          for k in keys]

    # ---------- single-step stateful path (two timesteps, state aliased) ----------
    neuron = IFNeuronPallas(q_threshold=q_threshold, level=level, sym=False)
    out1 = jax.block_until_ready(neuron(xs[0]))
    out2 = jax.block_until_ready(neuron(xs[1]))

    q_ref = jnp.full((N, C, H, W), 0.5, dtype=jnp.float32)
    acc_ref = jnp.zeros((N, C, H, W), dtype=jnp.float32)
    ref1, q_ref, acc_ref = _reference_forward(xs[0], q_ref, acc_ref,
                                              q_threshold, pos_max, neg_min)
    ref2, q_ref, acc_ref = _reference_forward(xs[1], q_ref, acc_ref,
                                              q_threshold, pos_max, neg_min)
    assert jnp.allclose(out1, ref1, atol=1e-6), "step-1 output mismatch"
    assert jnp.allclose(out2, ref2, atol=1e-6), "step-2 output mismatch"

    total = out1.size
    q_k = neuron._q.reshape(-1)[:total].reshape(N, C, H, W)
    acc_k = neuron._acc.astype(jnp.float32).reshape(-1)[:total].reshape(N, C, H, W)
    assert jnp.allclose(q_k, q_ref, atol=1e-6), "q state mismatch"
    assert jnp.allclose(acc_k, acc_ref, atol=1e-6), "acc_q state mismatch"

    # ---------- fused multi-timestep path (q/acc resident in VMEM over T) ----------
    x_seq = jnp.stack(xs)                     # [T, N, C, H, W]
    neuron2 = IFNeuronPallas(q_threshold=q_threshold, level=level, sym=False)
    out_seq = jax.block_until_ready(neuron2.forward_sequence(x_seq))

    q_r = jnp.full((N, C, H, W), 0.5, dtype=jnp.float32)
    a_r = jnp.zeros((N, C, H, W), dtype=jnp.float32)
    refs = []
    for t in range(T):
        r_t, q_r, a_r = _reference_forward(xs[t], q_r, a_r,
                                           q_threshold, pos_max, neg_min)
        refs.append(r_t)
    ref_seq = jnp.stack(refs)
    assert jnp.allclose(out_seq, ref_seq, atol=1e-6), "sequence output mismatch"

    q_k2 = neuron2._q.reshape(-1)[:total].reshape(N, C, H, W)
    acc_k2 = neuron2._acc.astype(jnp.float32).reshape(-1)[:total].reshape(N, C, H, W)
    assert jnp.allclose(q_k2, q_r, atol=1e-6), "sequence q state mismatch"
    assert jnp.allclose(acc_k2, a_r, atol=1e-6), "sequence acc_q state mismatch"

    print("KERNEL_OK")
</pallas_src>

<mosaic_0001>
module attributes {stable_mosaic.version = 11 : i64} {
  func.func @_if_step_kernel(%arg0: i32, %arg1: memref<4x512xf32, #tpu.memory_space<vmem>>, %arg2: memref<4x512xf32, #tpu.memory_space<vmem>>, %arg3: memref<4x512xi8, #tpu.memory_space<vmem>>, %arg4: memref<4x512xf32, #tpu.memory_space<vmem>>, %arg5: memref<4x512xf32, #tpu.memory_space<vmem>>, %arg6: memref<4x512xi8, #tpu.memory_space<vmem>>) attributes {dimension_semantics = [#tpu.dimension_semantics<parallel>], iteration_bounds = array<i64: 1>, scalar_prefetch = 0 : i64, scratch_operands = 0 : i64, tpu.core_type = #tpu.core_type<tc>, window_params = [{transform_indices = @transform_0, window_bounds = array<i64: 4, 512>}, {transform_indices = @transform_1, window_bounds = array<i64: 4, 512>}, {transform_indices = @transform_2, window_bounds = array<i64: 4, 512>}, {transform_indices = @transform_3, window_bounds = array<i64: 4, 512>}, {transform_indices = @transform_4, window_bounds = array<i64: 4, 512>}, {transform_indices = @transform_5, window_bounds = array<i64: 4, 512>}]} {
    %c0 = arith.constant 0 : index
    %c0_0 = arith.constant 0 : index
    %0 = vector.load %arg1[%c0, %c0_0] : memref<4x512xf32, #tpu.memory_space<vmem>>, vector<4x512xf32>
    %cst = arith.constant 1.000000e-01 : f32
    %1 = vector.broadcast %cst : f32 to vector<4x512xf32>
    %2 = arith.divf %0, %1 : vector<4x512xf32>
    %c0_1 = arith.constant 0 : index
    %c0_2 = arith.constant 0 : index
    %3 = vector.load %arg2[%c0_1, %c0_2] : memref<4x512xf32, #tpu.memory_space<vmem>>, vector<4x512xf32>
    %4 = arith.addf %3, %2 : vector<4x512xf32>
    %c0_3 = arith.constant 0 : index
    %c0_4 = arith.constant 0 : index
    %5 = vector.load %arg3[%c0_3, %c0_4] : memref<4x512xi8, #tpu.memory_space<vmem>>, vector<4x512xi8>
    %6 = arith.sitofp %5 : vector<4x512xi8> to vector<4x512xf32>
    %cst_5 = arith.constant 1.000000e+00 : f32
    %7 = vector.broadcast %cst_5 : f32 to vector<4x512xf32>
    %8 = arith.subf %4, %7 : vector<4x512xf32>
    %cst_6 = arith.constant 0.000000e+00 : f32
    %9 = vector.broadcast %cst_6 : f32 to vector<4x512xf32>
    %10 = arith.cmpf oge, %8, %9 : vector<4x512xf32>
    %cst_7 = arith.constant 3.000000e+00 : f32
    %11 = vector.broadcast %cst_7 : f32 to vector<4x512xf32>
    %12 = arith.cmpf olt, %6, %11 : vector<4x512xf32>
    %13 = arith.andi %10, %12 : vector<4x512xi1>
    %cst_8 = arith.constant 0.000000e+00 : f32
    %14 = vector.broadcast %cst_8 : f32 to vector<4x512xf32>
    %15 = arith.cmpf olt, %4, %14 : vector<4x512xf32>
    %cst_9 = arith.constant 0.000000e+00 : f32
    %16 = vector.broadcast %cst_9 : f32 to vector<4x512xf32>
    %17 = arith.cmpf ogt, %6, %16 : vector<4x512xf32>
    %18 = arith.andi %15, %17 : vector<4x512xi1>
    %19 = arith.extui %13 : vector<4x512xi1> to vector<4x512xi32>
    %20 = arith.sitofp %19 : vector<4x512xi32> to vector<4x512xf32>
    %21 = arith.extui %18 : vector<4x512xi1> to vector<4x512xi32>
    %22 = arith.sitofp %21 : vector<4x512xi32> to vector<4x512xf32>
    %23 = arith.subf %20, %22 : vector<4x512xf32>
    %cst_10 = arith.constant 1.000000e-01 : f32
    %24 = vector.broadcast %cst_10 : f32 to vector<4x512xf32>
    %25 = arith.mulf %23, %24 : vector<4x512xf32>
    %c0_11 = arith.constant 0 : index
    %c0_12 = arith.constant 0 : index
    %26 = vector.load %arg4[%c0_11, %c0_12] : memref<4x512xf32, #tpu.memory_space<vmem>>, vector<4x512xf32>
    tpu.vector_store %arg4[%c0_11, %c0_12], %25 {strides = array<i32>} : memref<4x512xf32, #tpu.memory_space<vmem>>, vector<4x512xf32>,
    %27 = arith.subf %4, %23 : vector<4x512xf32>
    %c0_13 = arith.constant 0 : index
    %c0_14 = arith.constant 0 : index
    %28 = vector.load %arg5[%c0_13, %c0_14] : memref<4x512xf32, #tpu.memory_space<vmem>>, vector<4x512xf32>
    tpu.vector_store %arg5[%c0_13, %c0_14], %27 {strides = array<i32>} : memref<4x512xf32, #tpu.memory_space<vmem>>, vector<4x512xf32>,
    %29 = arith.addf %6, %23 : vector<4x512xf32>
    %30 = arith.fptosi %29 : vector<4x512xf32> to vector<4x512xi8>
    %c0_15 = arith.constant 0 : index
    %c0_16 = arith.constant 0 : index
    %31 = vector.load %arg6[%c0_15, %c0_16] : memref<4x512xi8, #tpu.memory_space<vmem>>, vector<4x512xi8>
    tpu.vector_store %arg6[%c0_15, %c0_16], %30 {strides = array<i32>} : memref<4x512xi8, #tpu.memory_space<vmem>>, vector<4x512xi8>,
    return
  }
  func.func @transform_0(%arg0: i32) -> (i32, i32) {
    %c0_i32 = arith.constant 0 : i32
    %c0_i32_0 = arith.constant 0 : i32
    return %arg0, %c0_i32 : i32, i32
  }
  func.func @transform_1(%arg0: i32) -> (i32, i32) {
    %c0_i32 = arith.constant 0 : i32
    %c0_i32_0 = arith.constant 0 : i32
    return %arg0, %c0_i32 : i32, i32
  }
  func.func @transform_2(%arg0: i32) -> (i32, i32) {
    %c0_i32 = arith.constant 0 : i32
    %c0_i32_0 = arith.constant 0 : i32
    return %arg0, %c0_i32 : i32, i32
  }
  func.func @transform_3(%arg0: i32) -> (i32, i32) {
    %c0_i32 = arith.constant 0 : i32
    %c0_i32_0 = arith.constant 0 : i32
    return %arg0, %c0_i32 : i32, i32
  }
  func.func @transform_4(%arg0: i32) -> (i32, i32) {
    %c0_i32 = arith.constant 0 : i32
    %c0_i32_0 = arith.constant 0 : i32
    return %arg0, %c0_i32 : i32, i32
  }
  func.func @transform_5(%arg0: i32) -> (i32, i32) {
    %c0_i32 = arith.constant 0 : i32
    %c0_i32_0 = arith.constant 0 : i32
    return %arg0, %c0_i32 : i32, i32
  }
}

</mosaic_0001>

<bundles_post_ra>
// kernel: step.1
= control target key start
LH: loop header
LB: loop body
LE: loop exit
PB: predicated region body
PF: predicated region fallthrough
CT: control target
= control target key end

     0   :  { %11 = vsyncpa [#allocation3], 0  ;;  %s478_s0 = inlined_call_operand.hbm [shape: f32[4,512], index: 0, kind: input, shape index: {}, may-alias: {0,3}]   ;;  %s479_s1 = inlined_call_operand.hbm [shape: f32[4,512], index: 1, kind: input, shape index: {}, may-alias: {1,4}]   ;;  %s480_s2 = inlined_call_operand.hbm [shape: s8[4,512], index: 2, kind: input, shape index: {}, may-alias: {2,5}]   ;;  %s481_s3 = inlined_call_operand.hbm [shape: f32[4,512], index: 3, kind: output, shape index: {0}, may-alias: {0,3}]   ;;  %s482_s4 = inlined_call_operand.hbm [shape: f32[4,512], index: 4, kind: output, shape index: {1}, may-alias: {1,4}]   ;;  %s483_s5 = inlined_call_operand.hbm [shape: s8[4,512], index: 5, kind: output, shape index: {2}, may-alias: {2,5}]  }
   0x1   :  { %12 = vsyncpa [#allocation6], 0 }
   0x2   :  { %13 = vsyncpa [#allocation4], 0 }
   0x3   :  { %14 = vsyncpa [#allocation10], 0  ;;  %s361_s18 = smov [#allocation5]   ;;  %s362_s20 = smov [#allocation2]  }
   0x4   :  { %s31_s19 = sshll.u32 %s361_s18, 4  ;;  %s21_s21 = sshll.u32 %s362_s20, 4  ;;  %s32_s19 = int_to_ptr.vmem [resolvable:$true] %s31_s19  ;;  %s22_s21 = int_to_ptr.vmem [resolvable:$true] %s21_s21 }
   0x5   :  { %s221_s24 = scalar_lea.hbm %s479_s1, 256 }
   0x6   :  { %p222_p0 = scmp.ne.s32.totalorder %s479_s1, %s221_s24  ;;  %p225_p1 = scmp.lt.u32.totalorder %s221_s24, %s479_s1 }
   0x8   :  { %p227_p2 = pnand %p225_p1, %p222_p0 }
   0xa   :  { %230 = shalt.err (!%p227_p2)
}
   0xb   :  { %s231_s29 = scalar_lea.vmem %s32_s19, 256  ;;  %p236_p4 = scmp.lt.s32.totalorder %s32_s19, %s32_s19 }
   0xc   :  { %p232_p3 = scmp.ne.s32.totalorder %s32_s19, %s231_s29  ;;  %p237_p5 = scmp.lt.s32.totalorder %s231_s29, %s231_s29 }
   0xe   :  { %p238_p6 = por %p237_p5, %p236_p4 }
  0x10   :  { %p239_p7 = pnand %p238_p6, %p232_p3 }
  0x12   :  { %242 = shalt.err (!%p239_p7)
}
  0x13   :  { %34 = dma.hbm_to_vmem [thread:$0]  %s479_s1, 256, %s32_s19, [#allocation6]  }
  0x14   :  { %s243_s9 = scalar_lea.hbm %s478_s0, 256 }
  0x15   :  { %p244_p8 = scmp.ne.s32.totalorder %s478_s0, %s243_s9  ;;  %p247_p9 = scmp.lt.u32.totalorder %s243_s9, %s478_s0 }
  0x17   :  { %p249_p10 = pnand %p247_p9, %p244_p8 }
  0x19   :  { %252 = shalt.err (!%p249_p10)
}
  0x1a   :  { %s253_s14 = scalar_lea.vmem %s22_s21, 256  ;;  %p258_p12 = scmp.lt.s32.totalorder %s22_s21, %s22_s21 }
  0x1b   :  { %p254_p11 = scmp.ne.s32.totalorder %s22_s21, %s253_s14  ;;  %p259_p13 = scmp.lt.s32.totalorder %s253_s14, %s253_s14 }
  0x1d   :  { %p260_p0 = por %p259_p13, %p258_p12 }
  0x1f   :  { %p261_p1 = pnand %p260_p0, %p254_p11 }
  0x21   :  { %264 = shalt.err (!%p261_p1)
}
  0x22   :  { %24 = dma.hbm_to_vmem [thread:$0]  %s478_s0, 256, %s22_s21, [#allocation3]  }
  0x23   :  { %s363_s16 = smov [#allocation7]   ;;  %s265_s20 = scalar_lea.hbm %s480_s2, 64 }
  0x24   :  { %s41_s17 = sshll.u32 %s363_s16, 4  ;;  %p266_p2 = scmp.ne.s32.totalorder %s480_s2, %s265_s20  ;;  %s42_s17 = int_to_ptr.vmem [resolvable:$true] %s41_s17 }
  0x25   :  { %p269_p3 = scmp.lt.u32.totalorder %s265_s20, %s480_s2 }
  0x27   :  { %p271_p4 = pnand %p269_p3, %p266_p2 }
  0x29   :  { %274 = shalt.err (!%p271_p4)
}
  0x2a   :  { %s275_s26 = scalar_lea.vmem %s42_s17, 64  ;;  %p280_p6 = scmp.lt.s32.totalorder %s42_s17, %s42_s17 }
  0x2b   :  { %p276_p5 = scmp.ne.s32.totalorder %s42_s17, %s275_s26  ;;  %p281_p7 = scmp.lt.s32.totalorder %s275_s26, %s275_s26 }
  0x2d   :  { %p282_p8 = por %p281_p7, %p280_p6 }
  0x2f   :  { %p283_p9 = pnand %p282_p8, %p276_p5 }
  0x31   :  { %286 = shalt.err (!%p283_p9)
}
  0x32   :  { %44 = dma.hbm_to_vmem [thread:$0]  %s480_s2, 64, %s42_s17, [#allocation6]  }
  0x33   :  { %353 = dma.done.wait [#allocation3], 256  }
  0x34   :  { %354 = vsyncadd [#allocation3], 4294967040 }
  0x35   :  { %355 = dma.done.wait [#allocation6], 320  }
  0x36   :  { %356 = vsyncadd [#allocation6], 4294966976  ;;  %v54_v0 = vld [vmem:[#allocation2] sm:$0xff]  ;;  %v59_v1 = vld [vmem:[#allocation5] sm:$0xff]  ;;  %v364_v15 = vmov 0.0   ;;  %v141_v23 = vlaneseq  ;;  %s366_s2 = smov [#allocation9]  }
  0x37   :  { %v63_v2 = vld [vmem:[#allocation7] sm:$0xf]  ;;  %v57_v3 = vmul.f32 10.0, %v54_v0  ;;  %v55_v5 = vld [vmem:[#allocation2 + $0x8] sm:$0xff]  ;;  %v60_v6 = vld [vmem:[#allocation5 + $0x8] sm:$0xff]  ;;  %s177_s27 = sshll.u32 %s366_s2, 4  ;;  %s178_s27 = int_to_ptr.vmem [resolvable:$true] %s177_s27 }
  0x38   :  { %v64_v4 = vunpack.c.0.s8 %v63_v2  ;;  %v65_v7 = vunpack.c.1.s8 %v63_v2  ;;  %v58_v8 = vmul.f32 10.0, %v55_v5  ;;  %v365_v21 = vmov 1966171168   ;;  %s367_s28 = smov [#allocation8]   ;;  %s287_s30 = scalar_lea.vmem %s178_s27, 256 }
  0x39   :  { %v61_v9 = vadd.f32 %v59_v1, %v57_v3  ;;  %v139_v22 = vunpack.c.l.s4 %v365_v21  ;;  %s167_s29 = sshll.u32 %s367_s28, 4  ;;  %v142_v34 = vshrl.u32 %v141_v23, 7  ;;  %p288_p10 = scmp.ne.s32.totalorder %s178_s27, %s287_s30  ;;  %s435_s29 = int_to_ptr.vmem [resolvable:$true] %s167_s29 }
  0x3a   :  { %v66_v10 = vcvt.s32.f32 %v64_v4  ;;  %v67_v11 = vcvt.s32.f32 %v65_v7  ;;  %v62_v12 = vadd.f32 %v60_v6, %v58_v8  ;;  %p292_p11 = scmp.lt.s32.totalorder %s178_s27, %s178_s27  ;;  %p293_p12 = scmp.lt.s32.totalorder %s287_s30, %s287_s30 }
  0x3b   :  { %v204_v13 = vadd.f32 -1.0, %v61_v9  ;;  %vm76_vm1 = vcmp.lt.f32.partialorder %v61_v9, 0.0  ;;  %v140_v33 = vunpack.c.0.s8 %v139_v22 }
  0x3c   :  { %vm72_vm0 = vcmp.lt.f32.partialorder %v66_v10, 3.0  ;;  %vm78_vm2 = vcmp.gt.f32.partialorder %v66_v10, 0.0  ;;  %v205_v14 = vadd.f32 -1.0, %v62_v12  ;;  %vm73_vm4 = vcmp.lt.f32.partialorder %v67_v11, 3.0  ;;  %p294_p13 = por %p293_p12, %p292_p11 }
  0x3d   :  { %vm80_vm3 = vmand %vm76_vm1, %vm78_vm2  ;;  %vm77_vm5 = vcmp.lt.f32.partialorder %v62_v12, 0.0  ;;  %vm79_vm6 = vcmp.gt.f32.partialorder %v67_v11, 0.0  ;;  %vm70_vm7 = vcmp.ge.f32.partialorder %v204_v13, 0.0 }
  0x3e   :  { %v208_v16 = vsel %vm80_vm3, 1.0, %v364_v15  ;;  %vm81_vm8 = vmand %vm77_vm5, %vm79_vm6  ;;  %vm71_vm10 = vcmp.ge.f32.partialorder %v205_v14, 0.0  ;;  %p295_p0 = pnand %p294_p13, %p288_p10 }
  0x3f   :  { %vm74_vm9 = vmand %vm70_vm7, %vm72_vm0  ;;  %v209_v17 = vsel %vm81_vm8, 1.0, %v364_v15 }
  0x40   :  { %v206_v18 = vsel %vm74_vm9, 1.0, %v364_v15  ;;  %vm75_vm11 = vmand %vm71_vm10, %vm73_vm4 }
  0x41   :  { %v90_v19 = vsub.f32 %v206_v18, %v208_v16  ;;  %v207_v20 = vsel %vm75_vm11, 1.0, %v364_v15 }
  0x42   :  { %v91_v24 = vsub.f32 %v207_v20, %v209_v17 }
  0x43   :  { %v96_v25 = vsub.f32 %v61_v9, %v90_v19  ;;  %v92_v26 = vmul.f32 0.1, %v90_v19  ;;  %v100_v27 = vadd.f32 %v90_v19, %v66_v10 }
  0x44   :  { %v97_v28 = vsub.f32 %v62_v12, %v91_v24  ;;  %v93_v29 = vmul.f32 0.1, %v91_v24  ;;  %v101_v30 = vadd.f32 %v91_v24, %v67_v11 }
  0x45   :  { %98 = vst [vmem:[#allocation9] sm:$0xff] %v96_v25  ;;  %94 = vst [vmem:[#allocation8] sm:$0xff] %v92_v26  ;;  %v104_v31 = vcombine.high %v100_v27, %v100_v27  ;;  %v108_v32 = vtrunc.f32 %v100_v27 }
  0x46   :  { %99 = vst [vmem:[#allocation9 + $0x8] sm:$0xff] %v97_v28  ;;  %95 = vst [vmem:[#allocation8 + $0x8] sm:$0xff] %v93_v29  ;;  %v105_v35 = vcombine.high %v101_v30, %v101_v30  ;;  %v110_v36 = vtrunc.f32 %v101_v30 }
  0x47   :  { %v109_v37 = vtrunc.f32 %v104_v31  ;;  %v112_v38 = vpack.c.f32.eXmY %v108_v32, %v108_v32, 312 }
  0x48   :  { %298 = shalt.err (!%p295_p0)
}
  0x49   :  { %s299_s8 = scalar_lea.hbm %s482_s4, 256 }
  0x4a   :  { %p300_p1 = scmp.ne.s32.totalorder %s482_s4, %s299_s8  ;;  %p303_p2 = scmp.lt.u32.totalorder %s299_s8, %s482_s4 }
  0x4c   :  { %p305_p3 = pnand %p303_p2, %p300_p1 }
  0x4e   :  { %308 = shalt.err (!%p305_p3)
}
  0x4f   :  { %180 = dma.vmem_to_hbm [thread:$0]  %s178_s27, 256, %s482_s4, [#allocation10]   ;;  %v111_v39 = vtrunc.f32 %v105_v35  ;;  %v124_v40 = vpack.c.f32.eXmY %v110_v36, %v110_v36, 312 }
  0x50   :  { %s309_s1 = scalar_lea.vmem %s435_s29, 256  ;;  %p314_p5 = scmp.lt.s32.totalorder %s435_s29, %s435_s29 }
  0x51   :  { %p310_p4 = scmp.ne.s32.totalorder %s435_s29, %s309_s1  ;;  %p315_p6 = scmp.lt.s32.totalorder %s309_s1, %s309_s1 }
  0x53   :  { %p316_p7 = por %p315_p6, %p314_p5 }
  0x55   :  { %p317_p8 = pnand %p316_p7, %p310_p4 }
  0x57   :  { %320 = shalt.err (!%p317_p8)
}
  0x58   :  { %s321_s17 = scalar_lea.hbm %s481_s3, 256 }
  0x59   :  { %p322_p9 = scmp.ne.s32.totalorder %s481_s3, %s321_s17  ;;  %p325_p10 = scmp.lt.u32.totalorder %s321_s17, %s481_s3 }
  0x5b   :  { %p327_p11 = pnand %p325_p10, %p322_p9 }
  0x5d   :  { %330 = shalt.err (!%p327_p11)
}
  0x5e   :  { %170 = dma.vmem_to_hbm [thread:$0]  %s435_s29, 256, %s481_s3, [#allocation4]   ;;  %v118_v41 = vpack.c.f32.eXmY %v109_v37, %v109_v37, 312  ;;  %v143_v42 = vsub.s32 %v140_v33, %v142_v34  ;;  %v130_v43 = vpack.c.f32.eXmY %v111_v39, %v111_v39, 312 }
  0x5f   :  { %s368_s24 = smov [#allocation11]  }
  0x60   :  { %v210_v44 = vpack.c.b8 %v118_v41, %v112_v38  ;;  %v211_v45 = vpack.c.b8 %v130_v43, %v124_v40  ;;  %s187_s25 = sshll.u32 %s368_s24, 4  ;;  %s188_s25 = int_to_ptr.vmem [resolvable:$true] %s187_s25 }
  0x61   :  { %s331_s26 = scalar_lea.vmem %s188_s25, 64  ;;  %p336_p13 = scmp.lt.s32.totalorder %s188_s25, %s188_s25 }
  0x62   :  { %v144_v46 = vrot.slane %v210_v44, %v143_v42  ;;  %v151_v47 = vrot.slane %v211_v45, %v143_v42  ;;  %p332_p12 = scmp.ne.s32.totalorder %s188_s25, %s331_s26  ;;  %p337_p0 = scmp.lt.s32.totalorder %s331_s26, %s331_s26 }
  0x64   :  { %v152_v48 = vcombine.low %v144_v46, %v151_v47  ;;  %p338_p1 = por %p337_p0, %p336_p13 }
  0x66   :  { %212 = vst.sshfl [vmem:[#allocation11] sm:$0x55 pattern:$0x73625140] %v152_v48  ;;  %p339_p2 = pnand %p338_p1, %p332_p12 }
  0x68   :  { %342 = shalt.err (!%p339_p2)
}
  0x69   :  { %s343_s21 = scalar_lea.hbm %s483_s5, 64 }
  0x6a   :  { %p344_p3 = scmp.ne.s32.totalorder %s483_s5, %s343_s21  ;;  %p347_p4 = scmp.lt.u32.totalorder %s343_s21, %s483_s5 }
  0x6c   :  { %p349_p5 = pnand %p347_p4, %p344_p3 }
  0x6e   :  { %352 = shalt.err (!%p349_p5)
}
  0x6f   :  { %190 = dma.vmem_to_hbm [thread:$0]  %s188_s25, 64, %s483_s5, [#allocation10]  }
  0x70   :  { %357 = dma.done.wait [#allocation4], 256  }
  0x71   :  { %358 = vsyncadd [#allocation4], 4294967040 }
  0x72   :  { %359 = dma.done.wait [#allocation10], 320  }
  0x73   :  { %360 = vsyncadd [#allocation10], 4294966976 }
  0x74   :  { %200 = vsyncpa [#allocation3], 1 }
  0x75   :  { %201 = vsyncpa [#allocation6], 1 }
  0x76   :  { %202 = vsyncpa [#allocation4], 1 }
  0x77   :  { %203 = vsyncpa [#allocation10], 1 }

</bundles_post_ra>
